<compile_context>
chip_gen: v6e
topology: v6e:2x2x1
jax: 0.10.0
libtpu: 0.0.40
codegen_flags: <defaults>
</compile_context>

<pallas_src>
import functools

import numpy as np
import jax
import jax.numpy as jnp
from jax.experimental import pallas as pl
from jax.experimental.pallas import tpu as pltpu


# --------------------------------------------------------------------------
# Pallas kernel: polyphase stride-2 transpose conv.
# --------------------------------------------------------------------------
def _up_convt_kernel(x_ref, xh_ref, w_ref, b_ref, o_ref, *, per_tap):
    # x_ref : (1, TH, W+1, Cin)     main rows of the tile (right edge pre-zeroed)
    # xh_ref: (1, 1,  W+1, Cin)     row just below the tile (row H of the padded
    #                               input is all zeros, so no clamp/select needed)
    # w_ref : (4*Cin, 4*Cout)       polyphase weights; row blocks [x00,x01,x10,x11],
    #                               col blocks [p00,p01,p10,p11]
    # b_ref : (1, 4*Cout)           bias tiled over the 4 phases (f32)
    # o_ref : (1, TH, 2, W, 2*Cout) depth-to-space output:
    #                               o[0,i,r,j,c*Cout:(c+1)*Cout] = pixel (2i+r, 2j+c)
    TH = x_ref.shape[1]
    W = x_ref.shape[2] - 1
    Cin = x_ref.shape[3]
    C4 = w_ref.shape[1]
    C2 = C4 // 2

    x_main = x_ref[0]                        # (TH, W+1, Cin)
    halo = xh_ref[0]                         # (1,  W+1, Cin)

    if per_tap:
        # Large-Cin path: four accumulating dots, no 4x-wide patches temporary.
        if TH > 1:
            x_shift = jnp.concatenate([x_main[1:TH], halo], axis=0)   # (TH, W+1, Cin)
        else:
            x_shift = halo
        x00 = x_main[:, 0:W, :].reshape(TH * W, Cin)
        x01 = x_main[:, 1:, :].reshape(TH * W, Cin)
        x10 = x_shift[:, 0:W, :].reshape(TH * W, Cin)
        x11 = x_shift[:, 1:, :].reshape(TH * W, Cin)
        acc = jnp.dot(x00, w_ref[0:Cin, :], preferred_element_type=jnp.float32)
        acc = acc + jnp.dot(x01, w_ref[Cin:2 * Cin, :],
                            preferred_element_type=jnp.float32)
        acc = acc + jnp.dot(x10, w_ref[2 * Cin:3 * Cin, :],
                            preferred_element_type=jnp.float32)
        acc = acc + jnp.dot(x11, w_ref[3 * Cin:4 * Cin, :],
                            preferred_element_type=jnp.float32)
    else:
        # Small-Cin path: single fused matmul with K = 4*Cin.
        x_ext = jnp.concatenate([x_main, halo], axis=0)               # (TH+1, W+1, Cin)
        patches = jnp.concatenate(
            [x_ext[0:TH, 0:W, :], x_ext[0:TH, 1:, :],
             x_ext[1:, 0:W, :], x_ext[1:, 1:, :]], axis=-1)           # (TH, W, 4*Cin)
        acc = jnp.dot(patches.reshape(TH * W, 4 * Cin), w_ref[...],
                      preferred_element_type=jnp.float32)

    acc = acc + b_ref[0, :].astype(jnp.float32)
    acc = acc.reshape(TH, W, C4).astype(o_ref.dtype)
    o_ref[0, :, 0, :, :] = acc[:, :, 0:C2]     # row phase 0: [p00 | p01]
    o_ref[0, :, 1, :, :] = acc[:, :, C2:]      # row phase 1: [p10 | p11]


# --------------------------------------------------------------------------
# Wrapper helpers.
# --------------------------------------------------------------------------
def _round_up(x, m):
    return ((x + m - 1) // m) * m


def _pick_tile_h(H, W, Cin, cout4, item, n_batch,
                 budget_bytes=6 << 20, max_rows=8192):
    """Largest row-tile whose in+out working set fits the budget; when the
    batch dim alone can't feed both v7x TensorCores, keep >= 2 row tiles."""
    cands = [d for d in range(1, H + 1) if H % d == 0]
    ok = [d for d in cands
          if d * (W + 1) * Cin * item + d * W * cout4 * item <= budget_bytes
          and d * W <= max_rows]
    if not ok:
        ok = [min(cands)]
    if n_batch < 2:
        multi = [d for d in ok if H // d >= 2]
        if multi:
            ok = multi
    return max(ok)


def conv_transpose2d_up_pallas(x_nchw, weight, bias, matmul_dtype=jnp.bfloat16,
                               tile_h=None, per_tap=None):
    """ConvTranspose2d(kernel=3, stride=2, padding=1) via a polyphase Pallas kernel.

    weight: (Cin, Cout, 3, 3) (PyTorch ConvTranspose2d layout), bias: (Cout,).
    Returns the NHWC feature map of shape (N, 2H-1, 2W-1, Cout) in matmul_dtype.
    """
    N, Cin, H, W = x_nchw.shape
    Cout = weight.shape[1]
    wd = matmul_dtype
    wd_item = np.dtype(wd).itemsize

    if per_tap is None:
        per_tap = Cin >= 64

    # Store lane dim is 2*Cout_p: pad to a multiple of 128 for realistic channel
    # counts (lane-dense stores), 8 for tiny ones.  Padded channels are zero.
    lane = 128 if Cout >= 64 else 8
    Cout_p = _round_up(2 * Cout, lane) // 2

    # NCHW -> NHWC, cast ONCE to the matmul dtype, and zero-pad one row below /
    # one column right so the kernel needs no edge handling at all.
    x = jnp.transpose(x_nchw, (0, 2, 3, 1)).astype(wd)
    x = jnp.pad(x, ((0, 0), (0, 1), (0, 1), (0, 0)))          # (N, H+1, W+1, Cin)

    # Polyphase weight matrix (4*Cin, 4*Cout_p); col blocks [p00, p01, p10, p11].
    def tap(kh, kw):
        t = weight[:, :, kh, kw].astype(wd)                   # (Cin, Cout)
        if Cout_p != Cout:
            t = jnp.pad(t, ((0, 0), (0, Cout_p - Cout)))
        return t

    Z = jnp.zeros((Cin, Cout_p), wd)
    w_mat = jnp.concatenate([
        jnp.concatenate([tap(1, 1), tap(1, 2), tap(2, 1), tap(2, 2)], axis=1),  # x00
        jnp.concatenate([Z,         tap(1, 0), Z,         tap(2, 0)], axis=1),  # x01
        jnp.concatenate([Z,         Z,         tap(0, 1), tap(0, 2)], axis=1),  # x10
        jnp.concatenate([Z,         Z,         Z,         tap(0, 0)], axis=1),  # x11
    ], axis=0)                                                 # (4*Cin, 4*Cout_p)
    b_p = jnp.pad(bias.astype(jnp.float32), (0, Cout_p - Cout))
    b4 = jnp.tile(b_p, 4).reshape(1, 4 * Cout_p)

    # Row-tile selection.
    if tile_h is not None and H % int(tile_h) == 0:
        TH = int(tile_h)
    else:
        TH = _pick_tile_h(H, W, Cin, 4 * Cout_p, wd_item, N)
    T = H // TH

    # VMEM budget: double-buffered operands (incl. weights) + in-kernel
    # temporaries; cap at 75% of the actual per-core VMEM (v7x has only 64 MiB).
    in_tile = TH * (W + 1) * Cin * wd_item
    halo_tile = (W + 1) * Cin * wd_item
    out_tile = TH * W * 4 * Cout_p * wd_item
    w_bytes = 16 * Cin * Cout_p * wd_item
    tmp = (6 if per_tap else 10) * in_tile + TH * W * 4 * Cout_p * 4
    work = 2 * (in_tile + halo_tile + out_tile + w_bytes + 16 * Cout_p) + tmp
    try:
        vmem_cap = int(pltpu.get_tpu_info().vmem_capacity_bytes)
    except Exception:
        vmem_cap = 64 * 2**20
    vmem_limit = int(min(max(2 * work, 16 * 2**20), (3 * vmem_cap) // 4))

    kernel = functools.partial(_up_convt_kernel, per_tap=per_tap)
    out5 = pl.pallas_call(
        kernel,
        out_shape=jax.ShapeDtypeStruct((N, H, 2, W, 2 * Cout_p), wd),
        grid=(N, T),
        in_specs=[
            # main rows of this tile
            pl.BlockSpec((1, TH, W + 1, Cin), lambda n, t: (n, t, 0, 0)),
            # one-row bottom halo (row H of the padded input is all zeros)
            pl.BlockSpec((1, 1, W + 1, Cin),
                         lambda n, t, TH=TH: (n, (t + 1) * TH, 0, 0)),
            # polyphase weights + bias (constant block -> DMA'd once)
            pl.BlockSpec((4 * Cin, 4 * Cout_p), lambda n, t: (0, 0)),
            pl.BlockSpec((1, 4 * Cout_p), lambda n, t: (0, 0)),
        ],
        out_specs=pl.BlockSpec((1, TH, 2, W, 2 * Cout_p),
                               lambda n, t: (n, t, 0, 0, 0)),
        compiler_params=pltpu.CompilerParams(
            dimension_semantics=("parallel", "parallel"),
            vmem_limit_bytes=vmem_limit),
    )(x, x, w_mat, b4)

    # Depth-to-space is a pure (contiguous) reshape thanks to the output layout.
    y = out5.reshape(N, 2 * H, 2 * W, Cout_p)
    return y[:, : 2 * H - 1, : 2 * W - 1, :Cout]   # true ConvTranspose2d output


def up_forward(inp_nchw, ref_big, weight, bias, matmul_dtype=jnp.bfloat16,
               tile_h=None, per_tap=None):
    """Full Up.forward for method='transpose2d'. Returns NCHW in inp's dtype."""
    orig_dtype = inp_nchw.dtype
    feat = conv_transpose2d_up_pallas(inp_nchw, weight, bias,
                                      matmul_dtype=matmul_dtype,
                                      tile_h=tile_h, per_tap=per_tap)
    # crop / zero-pad to ref_big's spatial shape (asymmetric split preserved)
    ref_h, ref_w = ref_big.shape[2], ref_big.shape[3]
    if feat.shape[1] > ref_h:
        feat = feat[:, :ref_h, :, :]
    if feat.shape[2] > ref_w:
        feat = feat[:, :, :ref_w, :]
    dh = ref_h - feat.shape[1]
    dw = ref_w - feat.shape[2]
    out = jnp.pad(feat, ((0, 0),
                         (dh // 2, dh - dh // 2),
                         (dw // 2, dw - dw // 2),
                         (0, 0)))
    return jnp.transpose(out, (0, 3, 1, 2)).astype(orig_dtype)   # NHWC -> NCHW


# --------------------------------------------------------------------------
# Independent numpy reference (direct ConvTranspose2d scatter semantics).
# --------------------------------------------------------------------------
def ref_up_forward(x, ref_big, W, b):
    N, Cin, H, Wd = x.shape
    Cout = W.shape[1]
    Ho, Wo = 2 * H - 1, 2 * Wd - 1
    out = np.zeros((N, Cout, Ho, Wo), np.float32)
    for n in range(N):
        for ih in range(H):
            for iw in range(Wd):
                for kh in range(3):
                    for kw in range(3):
                        oh = 2 * ih - 1 + kh
                        ow = 2 * iw - 1 + kw
                        if 0 <= oh < Ho and 0 <= ow < Wo:
                            out[n, :, oh, ow] += x[n, :, ih, iw] @ W[:, :, kh, kw]
    out += b.reshape(1, Cout, 1, 1)
    ref_h, ref_w = ref_big.shape[2], ref_big.shape[3]
    dh = ref_h - out.shape[2]
    dw = ref_w - out.shape[3]
    if dh < 0:
        out = out[:, :, :ref_h, :]
        dh = 0
    if dw < 0:
        out = out[:, :, :, :ref_w]
        dw = 0
    out = np.pad(out, ((0, 0), (0, 0),
                       (dh // 2, dh - dh // 2),
                       (dw // 2, dw - dw // 2)))
    return out


if __name__ == "__main__":
    key = jax.random.PRNGKey(0)
    k1, k2, k3, k4 = jax.random.split(key, 4)

    N, nf_in, H, W = 2, 4, 8, 8        # inp_t: (2, 4, 8, 8)
    Cout = nf_in // 2
    ref_big = jax.random.normal(k4, (N, Cout, 16, 16), jnp.float32)  # only shape used

    inp_t = jax.random.normal(k1, (N, nf_in, H, W), jnp.float32)
    # ConvTranspose2d(nf_in, nf_in//2, 3): weight (Cin, Cout, 3, 3), bias (Cout,)
    weight = 0.1 * jax.random.normal(k2, (nf_in, Cout, 3, 3), jnp.float32)
    bias = 0.1 * jax.random.normal(k3, (Cout,), jnp.float32)

    expected = ref_up_forward(np.asarray(inp_t), np.asarray(ref_big),
                              np.asarray(weight), np.asarray(bias))

    # 1) exact f32 opt-in path (single row tile, fused matmul)
    out_f32 = jax.block_until_ready(
        up_forward(inp_t, ref_big, weight, bias, matmul_dtype=jnp.float32))
    assert out_f32.shape == (N, Cout, 16, 16), out_f32.shape
    np.testing.assert_allclose(np.asarray(out_f32), expected, atol=1e-4, rtol=1e-4)

    # 2) default bf16 MXU path (f32 accumulation, bf16 I/O)
    out_bf16 = jax.block_until_ready(up_forward(inp_t, ref_big, weight, bias))
    assert out_bf16.shape == (N, Cout, 16, 16), out_bf16.shape
    np.testing.assert_allclose(np.asarray(out_bf16), expected, atol=5e-2, rtol=5e-2)

    # 3) multi-tile path (exercises the halo BlockSpec; grid=(N, 4))
    out_tiled = jax.block_until_ready(
        up_forward(inp_t, ref_big, weight, bias,
                   matmul_dtype=jnp.float32, tile_h=2))
    np.testing.assert_allclose(np.asarray(out_tiled), expected, atol=1e-4, rtol=1e-4)

    # 4) per-tap (large-Cin) matmul strategy, forced on the small test shape
    out_tap = jax.block_until_ready(
        up_forward(inp_t, ref_big, weight, bias,
                   matmul_dtype=jnp.float32, tile_h=4, per_tap=True))
    np.testing.assert_allclose(np.asarray(out_tap), expected, atol=1e-4, rtol=1e-4)

    print("KERNEL_OK")
</pallas_src>

<mosaic_0001>
module attributes {stable_mosaic.version = 11 : i64} {
  func.func @_up_convt_kernel(%arg0: i32, %arg1: i32, %arg2: memref<1x8x9x4xf32, #tpu.memory_space<vmem>>, %arg3: memref<1x1x9x4xf32, #tpu.memory_space<vmem>>, %arg4: memref<16x16xf32, #tpu.memory_space<vmem>>, %arg5: memref<1x16xf32, #tpu.memory_space<vmem>>, %arg6: memref<1x8x2x8x8xf32, #tpu.memory_space<vmem>>) attributes {dimension_semantics = [#tpu.dimension_semantics<parallel>, #tpu.dimension_semantics<parallel>], iteration_bounds = array<i64: 2, 1>, scalar_prefetch = 0 : i64, scratch_operands = 0 : i64, tpu.core_type = #tpu.core_type<tc>, window_params = [{transform_indices = @transform_0, window_bounds = array<i64: 1, 8, 9, 4>}, {transform_indices = @transform_1, window_bounds = array<i64: 1, 1, 9, 4>}, {pipeline_mode = #tpu.pipeline_mode<synchronous>, transform_indices = @transform_2, window_bounds = array<i64: 16, 16>}, {pipeline_mode = #tpu.pipeline_mode<synchronous>, transform_indices = @transform_3, window_bounds = array<i64: 1, 16>}, {transform_indices = @transform_4, window_bounds = array<i64: 1, 8, 2, 8, 8>}]} {
    %c0 = arith.constant 0 : index
    %c0_0 = arith.constant 0 : index
    %c0_1 = arith.constant 0 : index
    %c0_2 = arith.constant 0 : index
    %0 = vector.load %arg2[%c0, %c0_0, %c0_1, %c0_2] : memref<1x8x9x4xf32, #tpu.memory_space<vmem>>, vector<1x8x9x4xf32>
    %1 = vector.shape_cast %0 : vector<1x8x9x4xf32> to vector<8x9x4xf32>
    %c0_3 = arith.constant 0 : index
    %c0_4 = arith.constant 0 : index
    %c0_5 = arith.constant 0 : index
    %c0_6 = arith.constant 0 : index
    %2 = vector.load %arg3[%c0_3, %c0_4, %c0_5, %c0_6] : memref<1x1x9x4xf32, #tpu.memory_space<vmem>>, vector<1x1x9x4xf32>
    %3 = vector.shape_cast %2 : vector<1x1x9x4xf32> to vector<1x9x4xf32>
    %4 = tpu.concatenate %1, %3 in 0 : vector<8x9x4xf32>, vector<1x9x4xf32> -> vector<9x9x4xf32>
    %5 = vector.extract_strided_slice %4 {offsets = [0, 0, 0], sizes = [8, 8, 4], strides = [1, 1, 1]} : vector<9x9x4xf32> to vector<8x8x4xf32>
    %6 = vector.extract_strided_slice %4 {offsets = [0, 1, 0], sizes = [8, 8, 4], strides = [1, 1, 1]} : vector<9x9x4xf32> to vector<8x8x4xf32>
    %7 = vector.extract_strided_slice %4 {offsets = [1, 0, 0], sizes = [8, 8, 4], strides = [1, 1, 1]} : vector<9x9x4xf32> to vector<8x8x4xf32>
    %8 = vector.extract_strided_slice %4 {offsets = [1, 1, 0], sizes = [8, 8, 4], strides = [1, 1, 1]} : vector<9x9x4xf32> to vector<8x8x4xf32>
    %9 = tpu.concatenate %5, %6, %7, %8 in 2 : vector<8x8x4xf32>, vector<8x8x4xf32>, vector<8x8x4xf32>, vector<8x8x4xf32> -> vector<8x8x16xf32>
    %10 = vector.shape_cast %9 : vector<8x8x16xf32> to vector<64x16xf32>
    %c0_7 = arith.constant 0 : index
    %c0_8 = arith.constant 0 : index
    %11 = vector.load %arg4[%c0_7, %c0_8] : memref<16x16xf32, #tpu.memory_space<vmem>>, vector<16x16xf32>
    %cst = arith.constant dense<0.000000e+00> : vector<64x16xf32>
    %12 = tpu.matmul %10, %11, %cst {dimension_numbers = #tpu.dot_dimension_numbers<[1], [0], [0], [1], [0, 0, 1, 1], [], []>} : vector<64x16xf32>, vector<16x16xf32>, vector<64x16xf32> -> vector<64x16xf32>
    %c0_9 = arith.constant 0 : index
    %c0_10 = arith.constant 0 : index
    %13 = vector.load %arg5[%c0_9, %c0_10] : memref<1x16xf32, #tpu.memory_space<vmem>>, vector<1x16xf32>
    %14 = vector.shape_cast %13 : vector<1x16xf32> to vector<16xf32>
    %15 = vector.shape_cast %14 : vector<16xf32> to vector<1x16xf32>
    %16 = vector.broadcast %15 : vector<1x16xf32> to vector<64x16xf32>
    %17 = arith.addf %12, %16 : vector<64x16xf32>
    %18 = vector.shape_cast %17 : vector<64x16xf32> to vector<8x8x16xf32>
    %19 = vector.extract_strided_slice %18 {offsets = [0, 0, 0], sizes = [8, 8, 8], strides = [1, 1, 1]} : vector<8x8x16xf32> to vector<8x8x8xf32>
    %c0_11 = arith.constant 0 : index
    %c0_12 = arith.constant 0 : index
    %c0_13 = arith.constant 0 : index
    %c0_14 = arith.constant 0 : index
    %c0_15 = arith.constant 0 : index
    %20 = vector.load %arg6[%c0_11, %c0_12, %c0_13, %c0_14, %c0_15] : memref<1x8x2x8x8xf32, #tpu.memory_space<vmem>>, vector<1x8x1x8x8xf32>
    %21 = vector.shape_cast %20 : vector<1x8x1x8x8xf32> to vector<8x8x8xf32>
    %22 = vector.shape_cast %19 : vector<8x8x8xf32> to vector<1x8x1x8x8xf32>
    tpu.vector_store %arg6[%c0_11, %c0_12, %c0_13, %c0_14, %c0_15], %22 {strides = array<i32>} : memref<1x8x2x8x8xf32, #tpu.memory_space<vmem>>, vector<1x8x1x8x8xf32>,
    %23 = vector.extract_strided_slice %18 {offsets = [0, 0, 8], sizes = [8, 8, 8], strides = [1, 1, 1]} : vector<8x8x16xf32> to vector<8x8x8xf32>
    %c0_16 = arith.constant 0 : index
    %c0_17 = arith.constant 0 : index
    %c1 = arith.constant 1 : index
    %c0_18 = arith.constant 0 : index
    %c0_19 = arith.constant 0 : index
    %24 = vector.load %arg6[%c0_16, %c0_17, %c1, %c0_18, %c0_19] : memref<1x8x2x8x8xf32, #tpu.memory_space<vmem>>, vector<1x8x1x8x8xf32>
    %25 = vector.shape_cast %24 : vector<1x8x1x8x8xf32> to vector<8x8x8xf32>
    %26 = vector.shape_cast %23 : vector<8x8x8xf32> to vector<1x8x1x8x8xf32>
    tpu.vector_store %arg6[%c0_16, %c0_17, %c1, %c0_18, %c0_19], %26 {strides = array<i32>} : memref<1x8x2x8x8xf32, #tpu.memory_space<vmem>>, vector<1x8x1x8x8xf32>,
    return
  }
  func.func @transform_0(%arg0: i32, %arg1: i32) -> (i32, i32, i32, i32) {
    %c0_i32 = arith.constant 0 : i32
    %c0_i32_0 = arith.constant 0 : i32
    %c0_i32_1 = arith.constant 0 : i32
    return %arg0, %arg1, %c0_i32, %c0_i32_0 : i32, i32, i32, i32
  }
  func.func @transform_1(%arg0: i32, %arg1: i32) -> (i32, i32, i32, i32) {
    %c1_i32 = arith.constant 1 : i32
    %0 = arith.addi %arg1, %c1_i32 : i32
    %c8_i32 = arith.constant 8 : i32
    %1 = arith.muli %0, %c8_i32 : i32
    %c0_i32 = arith.constant 0 : i32
    %c0_i32_0 = arith.constant 0 : i32
    %c0_i32_1 = arith.constant 0 : i32
    return %arg0, %1, %c0_i32, %c0_i32_0 : i32, i32, i32, i32
  }
  func.func @transform_2(%arg0: i32, %arg1: i32) -> (i32, i32) {
    %c0_i32 = arith.constant 0 : i32
    %c0_i32_0 = arith.constant 0 : i32
    %c0_i32_1 = arith.constant 0 : i32
    return %c0_i32, %c0_i32_0 : i32, i32
  }
  func.func @transform_3(%arg0: i32, %arg1: i32) -> (i32, i32) {
    %c0_i32 = arith.constant 0 : i32
    %c0_i32_0 = arith.constant 0 : i32
    %c0_i32_1 = arith.constant 0 : i32
    return %c0_i32, %c0_i32_0 : i32, i32
  }
  func.func @transform_4(%arg0: i32, %arg1: i32) -> (i32, i32, i32, i32, i32) {
    %c0_i32 = arith.constant 0 : i32
    %c0_i32_0 = arith.constant 0 : i32
    %c0_i32_1 = arith.constant 0 : i32
    %c0_i32_2 = arith.constant 0 : i32
    return %arg0, %arg1, %c0_i32, %c0_i32_0, %c0_i32_1 : i32, i32, i32, i32, i32
  }
}

</mosaic_0001>

<bundles_post_ra>
// kernel: tpu_custom_call.1
= control target key start
LH: loop header
LB: loop body
LE: loop exit
PB: predicated region body
PF: predicated region fallthrough
CT: control target
= control target key end

     0   :  { %9 = vsyncpa [#allocation3], 0  ;;  %s1304_s0 = inlined_call_operand.vmem [shape: f32[2,9,9,4], index: 0, kind: input, shape index: {}]   ;;  %s1305_s1 = inlined_call_operand.vmem [shape: f32[2,9,9,4], index: 1, kind: input, shape index: {}]   ;;  %s1306_s2 = inlined_call_operand.vmem [shape: f32[16,16], index: 2, kind: input, shape index: {}]   ;;  %s1307_s3 = inlined_call_operand.vmem [shape: f32[1,16], index: 3, kind: input, shape index: {}]   ;;  %s1308_s4 = inlined_call_operand.hbm [shape: f32[2,8,2,8,8], index: 4, kind: output, shape index: {}]  }
   0x1   :  { %11 = vsyncpa [#allocation3 + $0x1], 0  ;;  %s1009_s15 = smov 0   ;;  %s1011_s16 = smov 0  }
   0x2   :  { %s1013_s17 = smov 0   ;;  %s1015_s18 = smov 0  }
   0x3   :  { %s1017_s19 = smov 0   ;;  %s1019_s20 = smov 0  }
   0x4 LB: > { %s774_s21 = sadd.s32 4294967295, %s976_s20   ;;  %s775_s22 = sadd.s32 4294967294, %s976_s20   ;;  %s976_s20 = sphi %s1019_s20, %s17_s20   ;;  %s972_s19 = sphi %s1017_s19, %s1315_s19   ;;  %s968_s18 = sphi %s1015_s18, %s1314_s18   ;;  %s964_s17 = sphi %s1013_s17, %s1313_s17   ;;  %s960_s16 = sphi %s1011_s16, %s1312_s16   ;;  %s956_s15 = sphi %s1009_s15, %s1311_s15  }
   0x5   : > { %s29_s23 = sadd.s32 1, %s972_s19  ;;  %s140_s24 = sadd.s32 1, %s964_s17 }
   0x6   : > { %p31_p0 = scmp.ge.s32.totalorder %s29_s23, 2  ;;  %p150_p1 = scmp.ne.s32.totalorder %s964_s17, %s960_s16 }
   0x7   : > { %p151_p2 = scmp.eq.s32.totalorder %s774_s21, 1  ;;  %p156_p3 = scmp.ne.s32.totalorder %s960_s16, %s956_s15 }
   0x8   : > { %s1317_s23 = smov (%p31_p0, %s29_s23), 0  ;;  %p157_p5 = scmp.eq.s32.totalorder %s775_s22, 1 }
   0x9   : > { %p1049_p4 = por %p151_p2, %p150_p1  ;;  %s135_s26 = ssub.s32 %s972_s19, %s1317_s23 }
   0xa   : > { %p778_p6 = scmp.ge.s32.totalorder %s976_s20, 1  ;;  %p138_p7 = scmp.eq.s32.totalorder %s135_s26, 0 }
   0xb   : > { %p1056_p8 = por %p157_p5, %p156_p3  ;;  %p221_p9 = scmp.lt.s32.totalorder %s976_s20, 3 }
   0xc   : > { %s1062_s28 = scalar_select %p138_p7, %s964_s17, %s140_s24  }
   0xd   : > { %p222_p10 = pnand %p778_p6, %p221_p9 }
   0xe   : > { %p274_p11 = scmp.lt.s32.totalorder (!%p222_p10), %s968_s18, 1  ;;  %s978_s8 = smov (!%p222_p10), 8  }
   0xf   : > { %225 = sbr.rel (%p222_p10) target bundleno = 517 (0x205), region = 36  ;;  %s979_s9 = smov (!%p222_p10), 4  }
  0x10   : > { %s980_s14 = smov (!%p222_p10), 12   ;;  %s806_s10 = sshll.u32 (!%p222_p10), %s968_s18, 11 }
  0x11   : > { %s982_s22 = smov (!%p222_p10), [#allocation2]  }
  0x12   : > { %s904_s24 = sshll.u32 (!%p222_p10), %s982_s22, 4  ;;  %s905_s24 = int_to_ptr.vmem [resolvable:$false] %s904_s24 }
  0x14   : > { %s1066_s29 = scalar_select %p274_p11, %s968_s18, 1  ;;  %vm337_vm0 = vcmask 1046528   ;;  %v467_v20 = vld [vmem:[%s1306_s2 + $0x8] sm:$0xff]  ;;  %v466_v21 = vld [vmem:[%s1306_s2] sm:$0xff]  ;;  %vm439_vm1 = vcmask 31744   ;;  %vm448_vm2 = vcmask 64512  }
  0x15   : > { %817 = vmatprep.subr.mxu0 %v467_v20  ;;  %833 = vmatprep.subr.mxu1 %v467_v20  ;;  %vm457_vm3 = vcmask 97280   ;;  %vm475_vm4 = vcmask 130048  }
  0x16   : > { %s837_s30 = smul.u32 144, %s1066_s29  ;;  %818 = vmatpush3.msra.mxu0 %v467_v20  ;;  %835 = vmatpush3.msra.mxu1 %v467_v20  ;;  %s265_s29 = sand.u32 1, %s960_s16  }
  0x17   : > { %819 = vmatprep.subr.mxu0 %v466_v21  ;;  %834 = vmatprep.subr.mxu1 %v466_v21  ;;  %s1258_s18 = scalar_lea.sflag [#allocation3], %s265_s29 }
  0x18   : > { %s1074_s7 = scalar_lea.vmem %s1304_s0, %s837_s30  ;;  %820 = vmatpush3.msra.mxu0 %v466_v21  ;;  %836 = vmatpush3.msra.mxu1 %v466_v21  ;;  %s805_s21 = sadd.s32 128, %s837_s30 }
  0x19   : > { %v1077_v0 = vld [vmem:[%s1074_s7 + $0x50] sm:$0xff]  ;;  %v306_v2 = vld [vmem:[%s1074_s7 + $0x18] sm:$0x1]  ;;  %v1089_v5 = vld [vmem:[%s1074_s7] sm:$0xff]  ;;  %s299_s26 = scalar_lea.vmem %s1305_s1, %s805_s21  ;;  %s779_s30 = sshll.u32 %s265_s29, 7 }
  0x1a   : > { %v1080_v1 = vld [vmem:[%s1074_s7 + $0x10] sm:$0xff]  ;;  %395 = vrot.lane.b32.xlu1 %v1077_v0, %s978_s8  ;;  %v342_v4 = vrot.slane %v306_v2, 1  ;;  %v304_v6 = vld [vmem:[%s1074_s7 + $0x8] sm:$0x1]  ;;  %v353_v7 = vrot.slane %v1077_v0, 1  ;;  %v338_v8 = vrot.slane %v1089_v5, 1 }
  0x1b   : > { %387 = vrot.lane.b32.xlu0 %v1080_v1, %s978_s8  ;;  %v341_v3 = vrot.slane %v1080_v1, 1  ;;  %v339_v9 = vrot.slane %v304_v6, 1  ;;  %v314_v10 = vld [vmem:[%s1074_s7 + $0x58] sm:$0x1]  ;;  %v1096_v11 = vld [vmem:[%s1074_s7 + $0x40] sm:$0xff]  ;;  %v1133_v32 = vld [vmem:[%s1074_s7 + $0x70] sm:$0xff] }
  0x1c   : > { %v354_v13 = vrot.slane %v314_v10, 1  ;;  %v312_v14 = vld [vmem:[%s1074_s7 + $0x48] sm:$0x1]  ;;  %v350_v15 = vrot.slane %v1096_v11, 1  ;;  %v1115_v22 = vld [vmem:[%s1074_s7 + $0x60] sm:$0xff]  ;;  %v1137_v34 = vld [vmem:[%s1074_s7 + $0x30] sm:$0xff] }
  0x1d   : > { %v343_v12 = vsel %vm337_vm0, %v341_v3, %v342_v4  ;;  %v340_v16 = vsel %vm337_vm0, %v338_v8, %v339_v9  ;;  %v351_v17 = vrot.slane %v312_v14, 1  ;;  %v1118_v23 = vld [vmem:[%s1074_s7 + $0x20] sm:$0xff]  ;;  %v316_v24 = vld [vmem:[%s1074_s7 + $0x68] sm:$0x1]  ;;  %v356_v26 = vrot.slane %v1115_v22, 1 }
  0x1e   : > { %364 = vrot.lane.b32.xlu1 %v343_v12, %s979_s9  ;;  %v355_v18 = vsel %vm337_vm0, %v353_v7, %v354_v13  ;;  %v308_v25 = vld [vmem:[%s1074_s7 + $0x28] sm:$0x1]  ;;  %v344_v27 = vrot.slane %v1118_v23, 1  ;;  %v357_v28 = vrot.slane %v316_v24, 1  ;;  %v318_v33 = vld [vmem:[%s1074_s7 + $0x78] sm:$0x1] }
  0x1f   : > { %362 = vrot.lane.b32.xlu0 %v340_v16, %s979_s9  ;;  %v352_v19 = vsel %vm337_vm0, %v350_v15, %v351_v17  ;;  %v345_v29 = vrot.slane %v308_v25, 1  ;;  %v310_v35 = vld [vmem:[%s1074_s7 + $0x38] sm:$0x1]  ;;  %v359_v36 = vrot.slane %v1133_v32, 1  ;;  %v360_v37 = vrot.slane %v318_v33, 1  ;;  %v319_v42 = vld [vmem:[%s299_s26] sm:$0xff] }
  0x20   : > { %v358_v30 = vsel %vm337_vm0, %v356_v26, %v357_v28  ;;  %v347_v38 = vrot.slane %v1137_v34, 1  ;;  %v348_v39 = vrot.slane %v310_v35, 1  ;;  %v320_v43 = vld [vmem:[%s299_s26 + $0x8] sm:$0x1]  ;;  %v412_v44 = vrot.slane %v319_v42, 1  ;;  %s1213_s7 = scalar_lea.vmem [#allocation2], %s779_s30 }
  0x21   : > { %v346_v31 = vsel %vm337_vm0, %v344_v27, %v345_v29  ;;  %v361_v40 = vsel %vm337_vm0, %v359_v36, %v360_v37  ;;  %v413_v45 = vrot.slane %v320_v43, 1  ;;  %s671_s11 = sshll.u32 %s1213_s7, 4  ;;  %s906_s26 = scalar_lea.vmem %s905_s24, 4096  ;;  %s1252_s11 = int_to_ptr.vmem [resolvable:$true] %s671_s11 }
  0x22   : > { %372 = vrot.lane.b32.xlu1 %v355_v18, %s979_s9  ;;  %v349_v41 = vsel %vm337_vm0, %v347_v38, %v348_v39  ;;  %s900_s21 = scalar_lea.vmem %s1252_s11, 2048  ;;  %p907_p1 = scmp.lt.s32.totalorder %s1252_s11, %s905_s24 }
  0x23   : > { %370 = vrot.lane.b32.xlu0 %v352_v19, %s979_s9  ;;  %v414_v46 = vsel %vm337_vm0, %v412_v44, %v413_v45  ;;  %p901_p12 = scmp.ne.s32.totalorder %s1252_s11, %s900_s21  ;;  %p908_p2 = scmp.lt.s32.totalorder %s906_s26, %s900_s21 }
  0x25   : > { %p902_p13 = pnand %p901_p12, %p1049_p4  ;;  %p909_p3 = por %p908_p2, %p907_p1 }
  0x26   : > { %397 = vrot.lane.b32.xlu1 %v1115_v22, %s978_s8 }
  0x27   : > { %389 = vrot.lane.b32.xlu0 %v1118_v23, %s978_s8  ;;  %p903_p0 = pneg %p902_p13 }
  0x29   : > { %p910_p5 = pnand %p909_p3, %p903_p0 }
  0x2a   : > { %423 = vrot.lane.b32.xlu1 %v355_v18, %s980_s14 }
  0x2b   : > { %415 = vrot.lane.b32.xlu0 %v343_v12, %s980_s14 }
  0x2e   : > { %425 = vrot.lane.b32.xlu1 %v358_v30, %s980_s14 }
  0x2f   : > { %417 = vrot.lane.b32.xlu0 %v346_v31, %s980_s14 }
  0x32   : > { %374 = vrot.lane.b32.xlu1 %v358_v30, %s979_s9 }
  0x33   : > { %366 = vrot.lane.b32.xlu0 %v346_v31, %s979_s9  ;;  %v782_v31 = vld [vmem:[%s1307_s3] ss:$0 sm:$0xff] }
  0x36   : > { %376 = vrot.lane.b32.xlu1 %v361_v40, %s979_s9 }
  0x37   : > { %368 = vrot.lane.b32.xlu0 %v349_v41, %s979_s9  ;;  %s981_s9 = smov 120  }
  0x3a   : > { %399 = vrot.lane.b32.xlu1 %v1133_v32, %s978_s8 }
  0x3b   : > { %391 = vrot.lane.b32.xlu0 %v1137_v34, %s978_s8 }
  0x3e   : > { %401 = vrot.lane.b32.xlu1 %v319_v42, %s978_s8 }
  0x3f   : > { %393 = vrot.lane.b32.xlu0 %v1096_v11, %s978_s8 }
  0x42   : > { %427 = vrot.lane.b32.xlu1 %v361_v40, %s980_s14 }
  0x43   : > { %419 = vrot.lane.b32.xlu0 %v349_v41, %s980_s14 }
  0x46   : > { %429 = vrot.lane.b32.xlu1 %v414_v46, %s980_s14 }
  0x47   : > { %421 = vrot.lane.b32.xlu0 %v352_v19, %s980_s14  ;;  %s1248_s14 = scalar_lea.hbm %s1308_s4, %s806_s10 }
  0x8c   : > { %v396_v47 = vpop.permute.xlu1 %395 }
  0x8d   : > { %v388_v48 = vpop.permute.xlu0 %387 }
  0x90   : > { %v365_v49 = vpop.permute.xlu1 %364 }
  0x91   : > { %v363_v50 = vpop.permute.xlu0 %362  ;;  %v441_v2 = vsel %vm439_vm1, %v1080_v1, %v365_v49 }
  0x92   : > { %v440_v55 = vsel %vm439_vm1, %v1089_v5, %v363_v50 }
  0x93   : > { %v449_v59 = vsel %vm448_vm2, %v440_v55, %v388_v48 }
  0x94   : > { %v373_v51 = vpop.permute.xlu1 %372 }
  0x95   : > { %v371_v52 = vpop.permute.xlu0 %370  ;;  %v445_v61 = vsel %vm439_vm1, %v1077_v0, %v373_v51 }
  0x96   : > { %v444_v56 = vsel %vm439_vm1, %v1096_v11, %v371_v52 }
  0x97   : > { %v453_v60 = vsel %vm448_vm2, %v444_v56, %v396_v47 }
  0x98   : > { %v398_v53 = vpop.permute.xlu1 %397 }
  0x99   : > { %v390_v54 = vpop.permute.xlu0 %389  ;;  %v454_v3 = vsel %vm448_vm2, %v445_v61, %v398_v53 }
  0x9a   : > { %v450_v4 = vsel %vm448_vm2, %v441_v2, %v390_v54 }
  0x9c   : > { %v424_v57 = vpop.permute.xlu1 %423 }
  0x9d   : > { %v416_v58 = vpop.permute.xlu0 %415  ;;  %v462_v63 = vsel %vm457_vm3, %v453_v60, %v424_v57 }
  0x9e   : > { %v458_v62 = vsel %vm457_vm3, %v449_v59, %v416_v58  ;;  %827 = vmatprep.mubr.msk.f32.mxu1 %vm475_vm4, %v462_v63 }
  0x9f   : > { %821 = vmatprep.mubr.msk.f32.mxu0 %vm475_vm4, %v458_v62 }
  0xa0   : > { %v426_v5 = vpop.permute.xlu1 %425 }
  0xa1   : > { %v418_v6 = vpop.permute.xlu0 %417  ;;  %v463_v7 = vsel %vm457_vm3, %v454_v3, %v426_v5 }
  0xa2   : > { %v459_v0 = vsel %vm457_vm3, %v450_v4, %v418_v6  ;;  %828 = vmatmul.mubr.msk.f32.vlgmr.msra.gmra.mxu1 %vm475_vm4, %v463_v7 }
  0xa3   : > { %822 = vmatmul.mubr.msk.f32.vlgmr.msra.gmra.mxu0 %vm475_vm4, %v459_v0 }
  0xa4   : > { %v375_v8 = vpop.permute.xlu1 %374 }
  0xa5   : > { %v367_v9 = vpop.permute.xlu0 %366  ;;  %v446_v15 = vsel %vm439_vm1, %v1115_v22, %v375_v8 }
  0xa6   : > { %v442_v16 = vsel %vm439_vm1, %v1118_v23, %v367_v9 }
  0xa8   : > { %v377_v10 = vpop.permute.xlu1 %376 }
  0xa9   : > { %v369_v11 = vpop.permute.xlu0 %368  ;;  %v447_v22 = vsel %vm439_vm1, %v1133_v32, %v377_v10 }
  0xaa   : > { %v443_v23 = vsel %vm439_vm1, %v1137_v34, %v369_v11 }
  0xac   : > { %v400_v12 = vpop.permute.xlu1 %399 }
  0xad   : > { %v392_v1 = vpop.permute.xlu0 %391  ;;  %v455_v17 = vsel %vm448_vm2, %v446_v15, %v400_v12 }
  0xae   : > { %v451_v18 = vsel %vm448_vm2, %v442_v16, %v392_v1 }
  0xb0   : > { %v402_v13 = vpop.permute.xlu1 %401 }
  0xb1   : > { %v394_v14 = vpop.permute.xlu0 %393  ;;  %v456_v25 = vsel %vm448_vm2, %v447_v22, %v402_v13 }
  0xb2   : > { %v452_v26 = vsel %vm448_vm2, %v443_v23, %v394_v14 }
  0xb4   : > { %v428_v19 = vpop.permute.xlu1 %427 }
  0xb5   : > { %v420_v20 = vpop.permute.xlu0 %419  ;;  %v464_v21 = vsel %vm457_vm3, %v455_v17, %v428_v19 }
  0xb6   : > { %v460_v24 = vsel %vm457_vm3, %v451_v18, %v420_v20  ;;  %830 = vmatprep.mubr.msk.f32.mxu1 %vm475_vm4, %v464_v21 }
  0xb7   : > { %824 = vmatprep.mubr.msk.f32.mxu0 %vm475_vm4, %v460_v24 }
  0xb8   : > { %v430_v27 = vpop.permute.xlu1 %429 }
  0xb9   : > { %v422_v28 = vpop.permute.xlu0 %421  ;;  %v465_v29 = vsel %vm457_vm3, %v456_v25, %v430_v27 }
  0xba   : > { %v461_v30 = vsel %vm457_vm3, %v452_v26, %v422_v28  ;;  %831 = vmatmul.mubr.msk.f32.gmra.mxu1 %vm475_vm4, %v465_v29 }
  0xbb   : > { %825 = vmatmul.mubr.msk.f32.gmra.mxu0 %vm475_vm4, %v461_v30 }
 0x162   : > { %v829_v33 = vpop.f32.mrf.mxu1 }
 0x163   : > { %v823_v32 = vpop.f32.mrf.mxu0  ;;  %v592_v35 = vadd.f32 %v829_v33, %v782_v31 }
 0x164   : > { %v572_v34 = vadd.f32 %v823_v32, %v782_v31  ;;  %v586_v37 = vpop.f32.mrf.mxu1 }
 0x165   : > { %v566_v36 = vpop.f32.mrf.mxu0  ;;  %610 = vst.msk [vmem:[%s1213_s7 + $0x50] sm:$0xff] %vm448_vm2, %v592_v35  ;;  %v587_v39 = vadd.f32 %v782_v31, %v586_v37 }
 0x166   : > { %606 = vst.msk [vmem:[%s1213_s7 + $0x10] sm:$0xff] %vm448_vm2, %v572_v34  ;;  %v567_v38 = vadd.f32 %v782_v31, %v566_v36  ;;  %623 = vrot.lane.b32.xlu1 %v572_v34, %s981_s9 }
 0x167   : > { %609 = vst.msk [vmem:[%s1213_s7 + $0x40] sm:$0xff] %vm448_vm2, %v587_v39 }
 0x168   : > { %605 = vst.msk [vmem:[%s1213_s7] sm:$0xff] %vm448_vm2, %v567_v38  ;;  %621 = vrot.lane.b32.xlu0 %v567_v38, %s981_s9 }
 0x16a   : > { %631 = vrot.lane.b32.xlu1 %v592_v35, %s981_s9 }
 0x16c   : > { %629 = vrot.lane.b32.xlu0 %v587_v39, %s981_s9 }
 0x17a   : > { %v832_v41 = vpop.f32.mrf.mxu1 }
 0x17b   : > { %v826_v40 = vpop.f32.mrf.mxu0  ;;  %v602_v43 = vadd.f32 %v832_v41, %v782_v31 }
 0x17c   : > { %v582_v42 = vadd.f32 %v826_v40, %v782_v31  ;;  %v596_v45 = vpop.f32.mrf.mxu1 }
 0x17d   : > { %v576_v44 = vpop.f32.mrf.mxu0  ;;  %612 = vst.msk [vmem:[%s1213_s7 + $0x70] sm:$0xff] %vm448_vm2, %v602_v43  ;;  %v597_v47 = vadd.f32 %v782_v31, %v596_v45 }
 0x17e   : > { %608 = vst.msk [vmem:[%s1213_s7 + $0x30] sm:$0xff] %vm448_vm2, %v582_v42  ;;  %v577_v46 = vadd.f32 %v782_v31, %v576_v44  ;;  %627 = vrot.lane.b32.xlu1 %v582_v42, %s981_s9 }
 0x17f   : > { %611 = vst.msk [vmem:[%s1213_s7 + $0x60] sm:$0xff] %vm448_vm2, %v597_v47 }
 0x180   : > { %607 = vst.msk [vmem:[%s1213_s7 + $0x20] sm:$0xff] %vm448_vm2, %v577_v46  ;;  %625 = vrot.lane.b32.xlu0 %v577_v46, %s981_s9 }
 0x182   : > { %635 = vrot.lane.b32.xlu1 %v602_v43, %s981_s9 }
 0x184   : > { %633 = vrot.lane.b32.xlu0 %v597_v47, %s981_s9 }
 0x1d8   : > { %v624_v48 = vpop.permute.xlu1 %623 }
 0x1d9   : > { %792 = vst.msk [vmem:[%s1213_s7 + $0x18] sm:$0xff] %vm448_vm2, %v624_v48 }
 0x1da   : > { %v622_v49 = vpop.permute.xlu0 %621 }
 0x1db   : > { %791 = vst.msk [vmem:[%s1213_s7 + $0x8] sm:$0xff] %vm448_vm2, %v622_v49 }
 0x1dc   : > { %v632_v50 = vpop.permute.xlu1 %631 }
 0x1dd   : > { %796 = vst.msk [vmem:[%s1213_s7 + $0x58] sm:$0xff] %vm448_vm2, %v632_v50 }
 0x1de   : > { %v630_v51 = vpop.permute.xlu0 %629 }
 0x1df   : > { %795 = vst.msk [vmem:[%s1213_s7 + $0x48] sm:$0xff] %vm448_vm2, %v630_v51 }
 0x1f0   : > { %v628_v52 = vpop.permute.xlu1 %627 }
 0x1f1   : > { %794 = vst.msk [vmem:[%s1213_s7 + $0x38] sm:$0xff] %vm448_vm2, %v628_v52 }
 0x1f2   : > { %v626_v53 = vpop.permute.xlu0 %625 }
 0x1f3   : > { %793 = vst.msk [vmem:[%s1213_s7 + $0x28] sm:$0xff] %vm448_vm2, %v626_v53 }
 0x1f4   : > { %v636_v54 = vpop.permute.xlu1 %635 }
 0x1f5   : > { %798 = vst.msk [vmem:[%s1213_s7 + $0x78] sm:$0xff] %vm448_vm2, %v636_v54 }
 0x1f6   : > { %v634_v55 = vpop.permute.xlu0 %633 }
 0x1f7   : > { %797 = vst.msk [vmem:[%s1213_s7 + $0x68] sm:$0xff] %vm448_vm2, %v634_v55 }
 0x1f8   : > { %913 = shalt.err (!%p910_p5)
}
 0x1f9   : > { %s914_s29 = scalar_lea.hbm %s1248_s14, 2048  ;;  %s918_s6 = scalar_lea.hbm %s1308_s4, 4096 }
 0x1fa   : > { %p915_p6 = scmp.ne.s32.totalorder %s1248_s14, %s914_s29  ;;  %p919_p10 = scmp.lt.s32.totalorder %s1248_s14, %s1308_s4 }
 0x1fb   : > { %p920_p11 = scmp.lt.s32.totalorder %s918_s6, %s914_s29 }
 0x1fc   : > { %p916_p7 = pnand %p915_p6, %p1049_p4 }
 0x1fd   : > { %p921_p12 = por %p920_p11, %p919_p10 }
 0x1fe   : > { %p917_p9 = pneg %p916_p7 }
 0x200   : > { %p922_p13 = pnand %p921_p12, %p917_p9 }
 0x202   : > { %925 = shalt.err (!%p922_p13)
}
 0x203   : > { %s983_s10 = smov 128  }
 0x204   : > { %839 = dma.vmem_to_hbm [thread:$0]  (%p1049_p4), %s1252_s11, 2048, %s1248_s14, %s1258_s18, %s983_s10, %s983_s10, %s978_s8  }
 0x205 PF: > { %p846_p0 = scmp.ge.s32.totalorder %s976_s20, 2  ;;  %s686_s12 = sand.u32 1, %s956_s15  }
 0x206   : > { %s687_s13 = scalar_lea.sflag [#allocation3], %s686_s12 }
 0x207   : > { %p842_p1 = pnand %p846_p0, %p1056_p8 }
 0x209   : > { %p843_p2 = pneg %p842_p1 }
 0x20b   : > { %951 = dma.done.wait (%p843_p2), %s687_s13, 2048  }
 0x20c   : > { %953 = vsyncadd (%p843_p2), %s687_s13, 4294965248  ;;  %s17_s20 = sadd.s32 1, %s976_s20   ;;  %s1311_s15 = smov %s960_s16 }
 0x20d   : > { %p14_p3 = scmp.ge.s32.totalorder %s17_s20, 4   ;;  %s1312_s16 = smov %s964_s17 }
 0x20e   : > { %s1313_s17 = smov %s1062_s28  ;;  %s1314_s18 = smov %s972_s19 }
 0x20f   : > { %s1315_s19 = smov %s1317_s23  ;;  %16 = sbr.rel (!%p14_p3) target bundleno = 4 (0x4), region = 75 }
 0x214   :  { %692 = vsyncpa [#allocation3], 1 }
 0x215   :  { %694 = vsyncpa [#allocation3 + $0x1], 1 }

</bundles_post_ra>
